<compile_context>
chip_gen: v6e
topology: v6e:2x2x1
jax: 0.10.0
libtpu: 0.0.40
codegen_flags: <defaults>
</compile_context>

<pallas_src>
import functools

import jax
import jax.numpy as jnp
from jax.experimental import pallas as pl
from jax.experimental.pallas import tpu as pltpu


def _round_up(v, m):
    return ((v + m - 1) // m) * m


def _patch_embed_kernel(x_ref, w_ref, pos_ref, o_ref):
    # x_ref:   (1, TN, K) bf16  patch tile for one batch element
    # w_ref:   (D, K)     bf16  projection weight (contraction on last dim)
    # pos_ref: (TN, D)    f32   positional embedding tile (+ conv bias folded in)
    # o_ref:   (1, TN, D) f32
    x = x_ref[0]                                             # (TN, K)
    proj = jax.lax.dot_general(
        x, w_ref[...],
        dimension_numbers=(((1,), (1,)), ((), ())),          # x @ w.T on the MXU
        preferred_element_type=jnp.float32)                  # (TN, D), f32 acc
    o_ref[0] = (proj + pos_ref[...]).astype(o_ref.dtype)


@functools.partial(jax.jit, static_argnames=("patch_size", "tile_n"))
def patch_embed_forward(x, conv_w, conv_b, cls_token, pos_embed,
                        patch_size, tile_n=256):
    """Replicates PatchEmbed.forward (eval mode).

    x:         (B, C, H, W)   float32, NCHW
    conv_w:    (D, C, P, P)   conv2d weight, kernel=stride=P
    conv_b:    (D,)           conv2d bias
    cls_token: (1, 1, D)
    pos_embed: (1, N+1, D)
    returns:   (B, N+1, D)    float32
    """
    B, C, H, W = x.shape
    P = patch_size
    D = conv_w.shape[0]
    nH, nW = H // P, W // P
    N = nH * nW
    K = C * P * P

    # --- patchify: (B, C, H, W) -> (B, N, C*P*P).  Under jit + allow_input_fusion
    # this producer can fuse into the pallas_call input DMA (no extra HBM pass).
    patches = x.reshape(B, C, nH, P, nW, P)
    patches = jnp.transpose(patches, (0, 2, 4, 1, 3, 5)).reshape(B, N, K)

    # conv weight (D, C, P, P) -> (D, K); flatten order matches the patches above.
    w2d = conv_w.reshape(D, K)

    # fold the conv bias into the patch-token positional embedding (kept f32).
    pos_pb = pos_embed[0, 1:, :] + conv_b[None, :]           # (N, D)
    pos_cls = pos_embed[:, 0:1, :]                           # (1, 1, D)

    # --- pad K to a lane/MXU-friendly multiple of 128 (zero pad: no effect on math).
    K_pad = _round_up(K, 128)
    if K_pad != K:
        patches = jnp.pad(patches, ((0, 0), (0, 0), (0, K_pad - K)))
        w2d = jnp.pad(w2d, ((0, 0), (0, K_pad - K)))

    # --- tile the token dimension (TN rows per grid step).
    if N <= tile_n:
        TN, N_pad = N, N
    else:
        TN = tile_n                       # keep tile_n a multiple of 8 (default 256)
        N_pad = _round_up(N, TN)
    if N_pad != N:
        patches = jnp.pad(patches, ((0, 0), (0, N_pad - N), (0, 0)))
        pos_pb = jnp.pad(pos_pb, ((0, N_pad - N), (0, 0)))

    # bf16 operands for the matmul; accumulation stays f32 inside the kernel.
    patches = patches.astype(jnp.bfloat16)
    w2d = w2d.astype(jnp.bfloat16)

    n_tiles = N_pad // TN

    out_patches = pl.pallas_call(
        _patch_embed_kernel,
        out_shape=jax.ShapeDtypeStruct((B, N_pad, D), jnp.float32),
        grid_spec=pltpu.PrefetchScalarGridSpec(
            num_scalar_prefetch=0,
            grid=(B, n_tiles),
            in_specs=[
                pl.BlockSpec((1, TN, K_pad), lambda b, n: (b, n, 0)),
                pl.BlockSpec((D, K_pad), lambda b, n: (0, 0)),
                pl.BlockSpec((TN, D), lambda b, n: (n, 0)),
            ],
            out_specs=pl.BlockSpec((1, TN, D), lambda b, n: (b, n, 0)),
        ),
        compiler_params=pltpu.CompilerParams(
            dimension_semantics=("parallel", "parallel"),
            allow_input_fusion=[True, False, False],
        ),
    )(patches, w2d, pos_pb)

    if N_pad != N:
        out_patches = out_patches[:, :N, :]

    # --- glue: cls token (expanded over batch) + its positional embedding, concat.
    cls_out = jnp.broadcast_to(cls_token + pos_cls, (B, 1, D))
    out = jnp.concatenate([cls_out, out_patches], axis=1)
    # pos_drop: dropout in eval mode -> identity.
    # TODO(synk): training-mode dropout (pos_drop) not implemented; eval semantics only.
    return out


def _reference(x, conv_w, conv_b, cls_token, pos_embed, P):
    """Pure-JAX f32 reference of the same forward pass (for sanity check)."""
    proj = jax.lax.conv_general_dilated(
        x, conv_w, window_strides=(P, P), padding="VALID",
        dimension_numbers=("NCHW", "OIHW", "NCHW"))
    proj = proj + conv_b[None, :, None, None]
    B, D, nH, nW = proj.shape
    tokens = proj.reshape(B, D, nH * nW).transpose(0, 2, 1)        # (B, N, D)
    cls = jnp.broadcast_to(cls_token, (B, 1, D))
    out = jnp.concatenate([cls, tokens], axis=1) + pos_embed
    return out


if __name__ == "__main__":
    # small, deterministic shapes
    B, C, H, W = 2, 4, 16, 16
    P = 8
    D = 128
    N = (H // P) * (W // P)

    key = jax.random.PRNGKey(0)
    k1, k2, k3, k4, k5 = jax.random.split(key, 5)
    x = jax.random.normal(k1, (B, C, H, W), dtype=jnp.float32)
    conv_w = 0.02 * jax.random.normal(k2, (D, C, P, P), dtype=jnp.float32)
    conv_b = 0.01 * jax.random.normal(k3, (D,), dtype=jnp.float32)
    cls_token = 0.02 * jax.random.normal(k4, (1, 1, D), dtype=jnp.float32)
    pos_embed = 0.02 * jax.random.normal(k5, (1, N + 1, D), dtype=jnp.float32)

    out = patch_embed_forward(x, conv_w, conv_b, cls_token, pos_embed,
                              patch_size=P)
    out = jax.block_until_ready(out)

    ref = _reference(x, conv_w, conv_b, cls_token, pos_embed, P)
    assert out.shape == (B, N + 1, D), out.shape
    # bf16 matmul operands -> looser tolerance than the pure-f32 reference
    assert jnp.allclose(out, ref, atol=2e-2, rtol=2e-2), "mismatch vs reference"

    print("KERNEL_OK")
</pallas_src>

<mosaic_0001>
module attributes {stable_mosaic.version = 11 : i64} {
  func.func @_patch_embed_kernel(%arg0: i32, %arg1: i32, %arg2: memref<1x4x256xbf16, #tpu.memory_space<vmem>>, %arg3: memref<128x256xbf16, #tpu.memory_space<vmem>>, %arg4: memref<4x128xf32, #tpu.memory_space<vmem>>, %arg5: memref<1x4x128xf32, #tpu.memory_space<vmem>>) attributes {dimension_semantics = [#tpu.dimension_semantics<parallel>, #tpu.dimension_semantics<parallel>], iteration_bounds = array<i64: 2, 1>, scalar_prefetch = 0 : i64, scratch_operands = 0 : i64, tpu.core_type = #tpu.core_type<tc>, window_params = [{transform_indices = @transform_0, window_bounds = array<i64: 1, 4, 256>}, {pipeline_mode = #tpu.pipeline_mode<synchronous>, transform_indices = @transform_1, window_bounds = array<i64: 128, 256>}, {transform_indices = @transform_2, window_bounds = array<i64: 4, 128>}, {transform_indices = @transform_3, window_bounds = array<i64: 1, 4, 128>}]} {
    %c0 = arith.constant 0 : index
    %c0_0 = arith.constant 0 : index
    %c0_1 = arith.constant 0 : index
    %0 = vector.load %arg2[%c0, %c0_0, %c0_1] : memref<1x4x256xbf16, #tpu.memory_space<vmem>>, vector<1x4x256xbf16>
    %1 = vector.shape_cast %0 : vector<1x4x256xbf16> to vector<4x256xbf16>
    %c0_2 = arith.constant 0 : index
    %c0_3 = arith.constant 0 : index
    %2 = vector.load %arg3[%c0_2, %c0_3] : memref<128x256xbf16, #tpu.memory_space<vmem>>, vector<128x256xbf16>
    %cst = arith.constant dense<0.000000e+00> : vector<4x128xf32>
    %3 = tpu.matmul %1, %2, %cst {dimension_numbers = #tpu.dot_dimension_numbers<[1], [1], [0], [0], [0, 0, 1, 0], [], []>} : vector<4x256xbf16>, vector<128x256xbf16>, vector<4x128xf32> -> vector<4x128xf32>
    %c0_4 = arith.constant 0 : index
    %c0_5 = arith.constant 0 : index
    %4 = vector.load %arg4[%c0_4, %c0_5] : memref<4x128xf32, #tpu.memory_space<vmem>>, vector<4x128xf32>
    %5 = arith.addf %3, %4 : vector<4x128xf32>
    %c0_6 = arith.constant 0 : index
    %c0_7 = arith.constant 0 : index
    %c0_8 = arith.constant 0 : index
    %6 = vector.load %arg5[%c0_6, %c0_7, %c0_8] : memref<1x4x128xf32, #tpu.memory_space<vmem>>, vector<1x4x128xf32>
    %7 = vector.shape_cast %6 : vector<1x4x128xf32> to vector<4x128xf32>
    %8 = vector.shape_cast %5 : vector<4x128xf32> to vector<1x4x128xf32>
    tpu.vector_store %arg5[%c0_6, %c0_7, %c0_8], %8 {strides = array<i32>} : memref<1x4x128xf32, #tpu.memory_space<vmem>>, vector<1x4x128xf32>,
    return
  }
  func.func @transform_0(%arg0: i32, %arg1: i32) -> (i32, i32, i32) {
    %c0_i32 = arith.constant 0 : i32
    %c0_i32_0 = arith.constant 0 : i32
    return %arg0, %arg1, %c0_i32 : i32, i32, i32
  }
  func.func @transform_1(%arg0: i32, %arg1: i32) -> (i32, i32) {
    %c0_i32 = arith.constant 0 : i32
    %c0_i32_0 = arith.constant 0 : i32
    %c0_i32_1 = arith.constant 0 : i32
    return %c0_i32, %c0_i32_0 : i32, i32
  }
  func.func @transform_2(%arg0: i32, %arg1: i32) -> (i32, i32) {
    %c0_i32 = arith.constant 0 : i32
    %c0_i32_0 = arith.constant 0 : i32
    return %arg1, %c0_i32 : i32, i32
  }
  func.func @transform_3(%arg0: i32, %arg1: i32) -> (i32, i32, i32) {
    %c0_i32 = arith.constant 0 : i32
    %c0_i32_0 = arith.constant 0 : i32
    return %arg0, %arg1, %c0_i32 : i32, i32, i32
  }
}

</mosaic_0001>

<bundles_post_ra>
// kernel: patch_embed_forward.1
= control target key start
LH: loop header
LB: loop body
LE: loop exit
PB: predicated region body
PF: predicated region fallthrough
CT: control target
= control target key end

     0   :  { %s588_s12 = smov 0   ;;  %s590_s13 = smov 0   ;;  %s679_s0 = inlined_call_operand.vmem [shape: bf16[2,4,256], index: 0, kind: input, shape index: {}]   ;;  %s680_s1 = inlined_call_operand.vmem [shape: bf16[128,256], index: 1, kind: input, shape index: {}]   ;;  %s681_s2 = inlined_call_operand.vmem [shape: f32[4,128], index: 2, kind: input, shape index: {}]   ;;  %s682_s3 = inlined_call_operand.vmem [shape: f32[2,4,128], index: 3, kind: output, shape index: {}]  }
   0x1   :  { %s592_s14 = smov 0  }
   0x2 LB: > { %s25_s15 = sadd.s32 1, %s562_s13  ;;  %p472_p0 = scmp.ge.s32.totalorder %s566_s14, 1  ;;  %s566_s14 = sphi %s592_s14, %s13_s14   ;;  %s562_s13 = sphi %s590_s13, %s684_s13   ;;  %s558_s12 = sphi %s588_s12, %s683_s12  }
   0x3   : > { %p27_p1 = scmp.ge.s32.totalorder %s25_s15, 2  ;;  %p166_p2 = scmp.lt.s32.totalorder %s566_s14, 3 }
   0x5   : > { %s686_s15 = smov (%p27_p1, %s25_s15), 0  ;;  %p167_p3 = pnand %p472_p0, %p166_p2 }
   0x6   : > { %p200_p4 = scmp.lt.s32.totalorder (!%p167_p3), %s558_s12, 1 }
   0x7   : > { %170 = sbr.rel (%p167_p3) target bundleno = 276 (0x114), region = 32 }
   0xc   : > { %v520_v0 = vld [vmem:[%s680_s1 + $0x74] ss:$8 sps:$4 sm:$0xff]   ;;  %v522_v1 = vld [vmem:[%s680_s1 + $0x70] ss:$8 sps:$4 sm:$0xff]   ;;  %v523_v2 = vld [vmem:[%s680_s1 + $0x64] ss:$8 sps:$4 sm:$0xff]  }
   0xd   : > { %330 = vmatprep.subr.bf16.mxu0 %v520_v0  ;;  %s688_s12 = smov (!%p200_p4, %s558_s12), 1  ;;  %v525_v3 = vld [vmem:[%s680_s1 + $0x60] ss:$8 sps:$4 sm:$0xff]   ;;  %v526_v4 = vld [vmem:[%s680_s1 + $0x54] ss:$8 sps:$4 sm:$0xff]  }
   0xe   : > { %331 = vmatpush1.bf16.xpose.msra.mxu0 %v522_v1  ;;  %s495_s22 = sshll.u32 %s688_s12, 2  ;;  %v528_v7 = vld [vmem:[%s680_s1 + $0x50] ss:$8 sps:$4 sm:$0xff]   ;;  %v529_v8 = vld [vmem:[%s680_s1 + $0x44] ss:$8 sps:$4 sm:$0xff]  }
   0xf   : > { %332 = vmatprep.subr.bf16.mxu0 %v523_v2  ;;  %s208_s29 = scalar_lea.vmem %s679_s0, %s495_s22  ;;  %v531_v9 = vld [vmem:[%s680_s1 + $0x40] ss:$8 sps:$4 sm:$0xff]   ;;  %v532_v10 = vld [vmem:[%s680_s1 + $0x34] ss:$8 sps:$4 sm:$0xff]   ;;  %v534_v11 = vld [vmem:[%s680_s1 + $0x30] ss:$8 sps:$4 sm:$0xff]   ;;  %s219_s7 = scalar_lea.vmem %s682_s3, %s495_s22 }
  0x10   : > { %v476_v5 = vld.sshfl [vmem:[%s208_s29] sm:$0x33 pattern:$0x76325410]  ;;  %v535_v12 = vld [vmem:[%s680_s1 + $0x24] ss:$8 sps:$4 sm:$0xff]  }
  0x11   : > { %v247_v6 = vcombine.high %v476_v5, %v476_v5  ;;  %v537_v13 = vld [vmem:[%s680_s1 + $0x20] ss:$8 sps:$4 sm:$0xff]   ;;  %v538_v14 = vld [vmem:[%s680_s1 + $0x14] ss:$8 sps:$4 sm:$0xff]   ;;  %v540_v15 = vld [vmem:[%s680_s1 + $0x10] ss:$8 sps:$4 sm:$0xff]  }
  0x12   : > { %v541_v16 = vld [vmem:[%s680_s1 + $0x4] ss:$8 sps:$4 sm:$0xff]   ;;  %v543_v17 = vld [vmem:[%s680_s1] ss:$8 sps:$4 sm:$0xff]  }
  0x13   : > { %362 = vmatprep.mubr.bf16.mxu0 %v247_v6  ;;  %v238_v18 = vld [vmem:[%s681_s2] sm:$0xf] }
  0x16   : > { %333 = vmatpush1.bf16.xpose.msra.mxu0 %v525_v3 }
  0x17   : > { %334 = vmatprep.subr.bf16.mxu0 %v526_v4 }
  0x1e   : > { %335 = vmatpush1.bf16.xpose.msra.mxu0 %v528_v7 }
  0x1f   : > { %336 = vmatprep.subr.bf16.mxu0 %v529_v8 }
  0x26   : > { %337 = vmatpush1.bf16.xpose.msra.mxu0 %v531_v9 }
  0x27   : > { %338 = vmatprep.subr.bf16.mxu0 %v532_v10 }
  0x2e   : > { %339 = vmatpush1.bf16.xpose.msra.mxu0 %v534_v11 }
  0x2f   : > { %340 = vmatprep.subr.bf16.mxu0 %v535_v12 }
  0x36   : > { %341 = vmatpush1.bf16.xpose.msra.mxu0 %v537_v13 }
  0x37   : > { %342 = vmatprep.subr.bf16.mxu0 %v538_v14 }
  0x3e   : > { %343 = vmatpush1.bf16.xpose.msra.mxu0 %v540_v15 }
  0x3f   : > { %344 = vmatprep.subr.bf16.mxu0 %v541_v16 }
  0x46   : > { %345 = vmatpush1.bf16.xpose.msra.mxu0 %v543_v17 }
  0x4d   : > { %363 = vmatmul.mubr.bf16.vlgmr.msra.gmra.mxu0 %v476_v5 }
 0x10d   : > { %v364_v19 = vpop.f32.mrf.mxu0 }
 0x10e   : > { %v365_v20 = vadd.f32 %v364_v19, %v238_v18 }
 0x10f   : > { %v366_v21 = vpop.f32.mrf.mxu0 }
 0x110   : > { %370 = vst [vmem:[%s219_s7] sm:$0xf] %v365_v20 }
 0x111   : > { %v367_v22 = vpop.f32.mrf.mxu0 }
 0x113   : > { %v368_v23 = vpop.f32.mrf.mxu0 }
 0x114 PF: > { %s13_s14 = sadd.s32 1, %s566_s14   ;;  %s683_s12 = smov %s562_s13 }
 0x115   : > { %p10_p5 = scmp.ge.s32.totalorder %s13_s14, 4   ;;  %s684_s13 = smov %s686_s15 }
 0x117   :  { %12 = sbr.rel (!%p10_p5) target bundleno = 2 (0x2), region = 65 }

</bundles_post_ra>
